<compile_context>
chip_gen: v7x
topology: tpu7x:2x2x1
jax: 0.10.0
libtpu: 0.0.40
codegen_flags: <defaults>
</compile_context>

<pallas_src>
import math

import jax
import jax.numpy as jnp
import numpy as np
from jax.experimental import pallas as pl
from jax.experimental.pallas import tpu as pltpu


_MAX_BB = 1024                      # batch tile (lane dim); sweep 512-2048.
_LOG_2PI = math.log(2.0 * math.pi)


# ------------------------------ kernel helpers -------------------------------

def _made_neg_log_prob_t(yt, cond, w1t, wct, b1t, wmat, bmat):
    """Gaussian-MADE -log p(y | cond), transposed: batch on lanes.

    yt: (D, bb), cond: (H, bb).  Returns (1, bb).
    """
    D = yt.shape[0]
    h = jnp.dot(w1t, yt, preferred_element_type=jnp.float32)
    h = h + jnp.dot(wct, cond, preferred_element_type=jnp.float32)
    h = jnp.maximum(h + b1t, 0.0)                                   # (Hm, bb)
    ma = jnp.dot(wmat, h, preferred_element_type=jnp.float32) + bmat  # (2D, bb)
    m = ma[:D]                      # sublane-group aligned (D multiple of 8)
    a = ma[D:]
    u = (yt - m) * jnp.exp(-a)
    s = jnp.sum(-0.5 * u * u - a, axis=0, keepdims=True)            # (1, bb)
    return (0.5 * D * _LOG_2PI) - s                                 # -log_prob


# ------------------------------- Pallas kernels -------------------------------

def _fused_forward_kernel(x_ref, y_ref, wband_ref, bconv_ref, wpool_ref,
                          bfc_ref, w1t_ref, wct_ref, b1t_ref, wmat_ref,
                          bmat_ref, o_ref):
    # x_ref: ((L+2)*C, bb) -- (length, channel) on sublanes, batch on lanes.
    # Conv1d(k=3, pad=1) over all output positions as ONE banded matmul.
    conv = jnp.dot(wband_ref[...], x_ref[...],
                   preferred_element_type=jnp.float32)              # (L*c_out, bb)
    conv = jnp.maximum(conv + bconv_ref[...], 0.0)
    # Mean pool over L (1/L folded into the weight) + Linear, fused into one matmul.
    cond = jnp.dot(wpool_ref[...], conv,
                   preferred_element_type=jnp.float32) + bfc_ref[...]   # (H, bb)
    o_ref[...] = _made_neg_log_prob_t(y_ref[...], cond, w1t_ref[...],
                                      wct_ref[...], b1t_ref[...],
                                      wmat_ref[...], bmat_ref[...])


def _flow_only_kernel(cond_ref, y_ref, w1t_ref, wct_ref, b1t_ref, wmat_ref,
                      bmat_ref, o_ref):
    # is_feature=True path: x already IS the conditioning vector.
    o_ref[...] = _made_neg_log_prob_t(y_ref[...], cond_ref[...], w1t_ref[...],
                                      wct_ref[...], b1t_ref[...],
                                      wmat_ref[...], bmat_ref[...])


# ---------------------------- pallas_call wrappers ----------------------------

def _wspec(shape):
    nd = len(shape)
    return pl.BlockSpec(shape, lambda i, _nd=nd: (0,) * _nd)


def _batch_tiling(B):
    """Return (bb, padded_B).  No asserts: remainders are handled by zero-pad."""
    if B <= _MAX_BB:
        return B, B
    bb = _MAX_BB
    Bp = ((B + bb - 1) // bb) * bb
    return bb, Bp


def fused_flow_neg_log_probs(params, x, y):
    """x: (B, C_in, L) NCL; y: (B, D). Returns (B, 1) negative log prob."""
    B, C, L = x.shape
    D = y.shape[1]
    wband = params["wband"]
    R, K = wband.shape                       # R = L*c_out, K = (L+2*pad)*C
    pad = (K // C - L) // 2
    H = params["wpoolfc"].shape[0]
    Hm = params["w1t"].shape[0]

    # Zero-FLOP layout plumbing only: NCL -> ((L+2)*C, B) with the conv's zero
    # padding, batch on lanes.  No im2col / data duplication; the k=3 taps are
    # folded into the banded weight built once at init.
    xflat = jnp.transpose(jnp.pad(x, ((0, 0), (0, 0), (pad, pad))),
                          (2, 1, 0)).reshape(K, B).astype(jnp.float32)
    yt = jnp.transpose(y).astype(jnp.float32)                       # (D, B)

    bb, Bp = _batch_tiling(B)
    if Bp != B:                              # remainder tile -> zero pad, slice later
        xflat = jnp.pad(xflat, ((0, 0), (0, Bp - B)))
        yt = jnp.pad(yt, ((0, 0), (0, Bp - B)))
    grid = (Bp // bb,)

    out = pl.pallas_call(
        _fused_forward_kernel,
        out_shape=jax.ShapeDtypeStruct((1, Bp), jnp.float32),
        grid=grid,
        in_specs=[
            pl.BlockSpec((K, bb), lambda i: (0, i)),
            pl.BlockSpec((D, bb), lambda i: (0, i)),
            _wspec((R, K)),
            _wspec((R, 1)),
            _wspec((H, R)),
            _wspec((H, 1)),
            _wspec((Hm, D)),
            _wspec((Hm, H)),
            _wspec((Hm, 1)),
            _wspec((2 * D, Hm)),
            _wspec((2 * D, 1)),
        ],
        out_specs=pl.BlockSpec((1, bb), lambda i: (0, i)),
        compiler_params=pltpu.CompilerParams(
            dimension_semantics=("parallel",)),
    )(xflat, yt, wband, params["conv_b_rep"], params["wpoolfc"],
      params["fc_b_t"], params["w1t"], params["wct"], params["b1t"],
      params["wmat"], params["bmat"])
    return out[:, :B].T                                             # (B, 1)


def flow_only_neg_log_probs(params, cond, y):
    B, D = y.shape
    H = cond.shape[1]
    Hm = params["w1t"].shape[0]
    condt = jnp.transpose(cond).astype(jnp.float32)                 # (H, B)
    yt = jnp.transpose(y).astype(jnp.float32)                       # (D, B)

    bb, Bp = _batch_tiling(B)
    if Bp != B:
        condt = jnp.pad(condt, ((0, 0), (0, Bp - B)))
        yt = jnp.pad(yt, ((0, 0), (0, Bp - B)))
    grid = (Bp // bb,)

    out = pl.pallas_call(
        _flow_only_kernel,
        out_shape=jax.ShapeDtypeStruct((1, Bp), jnp.float32),
        grid=grid,
        in_specs=[
            pl.BlockSpec((H, bb), lambda i: (0, i)),
            pl.BlockSpec((D, bb), lambda i: (0, i)),
            _wspec((Hm, D)),
            _wspec((Hm, H)),
            _wspec((Hm, 1)),
            _wspec((2 * D, Hm)),
            _wspec((2 * D, 1)),
        ],
        out_specs=pl.BlockSpec((1, bb), lambda i: (0, i)),
        compiler_params=pltpu.CompilerParams(
            dimension_semantics=("parallel",)),
    )(condt, yt, params["w1t"], params["wct"], params["b1t"],
      params["wmat"], params["bmat"])
    return out[:, :B].T                                             # (B, 1)


# ---------------------------------- Flow API ----------------------------------

def flow_forward(params, x, y, is_feature=False, reduce=True, aux=None):
    """Mirrors Flow.forward(x, y, is_feature, reduce) for the density path."""
    del aux
    if is_feature:
        neg_log_probs = flow_only_neg_log_probs(params, x, y)
    else:
        neg_log_probs = fused_flow_neg_log_probs(params, x, y)
    # Kernel already returns (B, 1); only reduce if anything is left.
    if reduce and neg_log_probs.shape[-1] != 1:
        neg_log_probs = jnp.sum(neg_log_probs, axis=-1, keepdims=True)
    return neg_log_probs
    # TODO(synk): `sample=True` / `return_entropy=True` require sequential
    # autoregressive inversion / sampling of the MADE flow and are not
    # implemented as Pallas kernels.


# --------------------------- deterministic parameters --------------------------

def make_params(key, c_in=4, kernel=3, c_out=16, cond_dim=32, y_dim=8,
                made_hidden=128, seq_len=16):
    ks = jax.random.split(key, 8)
    s = 0.1
    conv_w = s * jax.random.normal(ks[0], (kernel, c_in, c_out), jnp.float32)
    conv_b = s * jax.random.normal(ks[1], (1, c_out), jnp.float32)
    fc_w = s * jax.random.normal(ks[2], (c_out, cond_dim), jnp.float32)
    fc_b = s * jax.random.normal(ks[3], (1, cond_dim), jnp.float32)

    # MADE masks: input/output degrees 1..D, hidden degrees cycle 1..D-1.
    deg_in = np.arange(1, y_dim + 1)
    deg_hid = (np.arange(made_hidden) % max(1, y_dim - 1)) + 1
    mask1 = (deg_hid[None, :] >= deg_in[:, None]).astype(np.float32)   # (D, Hm)
    mask2 = (deg_in[None, :] > deg_hid[:, None]).astype(np.float32)    # (Hm, D)

    w1 = s * jax.random.normal(ks[4], (y_dim, made_hidden), jnp.float32)
    wc = s * jax.random.normal(ks[5], (cond_dim, made_hidden), jnp.float32)
    b1 = jnp.zeros((1, made_hidden), jnp.float32)
    wm = s * jax.random.normal(ks[6], (made_hidden, y_dim), jnp.float32)
    wa = s * jax.random.normal(ks[7], (made_hidden, y_dim), jnp.float32)
    w1m = w1 * jnp.asarray(mask1)
    # Fused (m | a) output head.
    wma = jnp.concatenate([wm * jnp.asarray(mask2), wa * jnp.asarray(mask2)],
                          axis=1)                                      # (Hm, 2D)
    bma = jnp.zeros((1, 2 * y_dim), jnp.float32)

    # ---- kernel-side fused / transposed weights (built once at init) --------
    pad = kernel // 2
    lp = seq_len + 2 * pad
    cw = np.asarray(conv_w)                                            # (k, C, c_out)
    # Banded conv weight: conv_all[l*c_out+o, b] = sum_{k,c} W[k,c,o]*xpad[b,c,l+k]
    wband = np.zeros((seq_len * c_out, lp * c_in), np.float32)
    for l in range(seq_len):
        for k in range(kernel):
            wband[l * c_out:(l + 1) * c_out,
                  (l + k) * c_in:(l + k + 1) * c_in] = cw[k].T
    conv_b_rep = np.tile(np.asarray(conv_b).reshape(-1), seq_len).reshape(-1, 1)
    # Mean-pool (1/L folded) + FC fused: cond = wpoolfc @ relu(conv_all) + fc_b
    wpoolfc = (np.tile(np.asarray(fc_w).T, (1, seq_len)) / seq_len).astype(np.float32)

    return {
        # reference-orientation weights
        "conv_w": conv_w, "conv_b": conv_b, "fc_w": fc_w, "fc_b": fc_b,
        "w1m": w1m, "wc": wc, "b1": b1, "wma": wma, "bma": bma,
        # kernel-orientation (batch-on-lanes) weights
        "wband": jnp.asarray(wband),
        "conv_b_rep": jnp.asarray(conv_b_rep, dtype=jnp.float32),
        "wpoolfc": jnp.asarray(wpoolfc),
        "fc_b_t": jnp.transpose(fc_b),
        "w1t": jnp.transpose(w1m),
        "wct": jnp.transpose(wc),
        "b1t": jnp.transpose(b1),
        "wmat": jnp.transpose(wma),
        "bmat": jnp.transpose(bma),
    }


# ----------------------------------- reference ---------------------------------

def reference_forward(params, x, y):
    B, C, L = x.shape
    kk = params["conv_w"].shape[0]
    pad = kk // 2
    xp = jnp.pad(x, ((0, 0), (0, 0), (pad, pad)))                  # (B, C, L+2p)
    c_out = params["conv_w"].shape[-1]
    conv = jnp.zeros((B, L, c_out), jnp.float32)
    for k in range(kk):
        conv = conv + jnp.einsum("bcl,co->blo", xp[:, :, k:k + L],
                                 params["conv_w"][k])
    conv = jnp.maximum(conv + params["conv_b"], 0.0)
    feat = conv.mean(axis=1)                                       # (B, C_out)
    cond = feat @ params["fc_w"] + params["fc_b"]                  # (B, H)
    return reference_flow_nlp(params, cond, y)


def reference_flow_nlp(params, cond, y):
    D = y.shape[1]
    h = jnp.maximum(y @ params["w1m"] + cond @ params["wc"] + params["b1"], 0.0)
    ma = h @ params["wma"] + params["bma"]
    m, a = ma[:, :D], ma[:, D:]
    u = (y - m) * jnp.exp(-a)
    lp = jnp.sum(-0.5 * u * u - a, axis=-1, keepdims=True) - 0.5 * D * _LOG_2PI
    return -lp


# -------------------------------------- main -----------------------------------

if __name__ == "__main__":
    key = jax.random.PRNGKey(0)
    kp, kx, ky, kc = jax.random.split(key, 4)

    B, C_IN, L = 8, 4, 16       # featurizer input (NCL)
    Y_DIM = 8                   # flow target dimension
    COND = 32
    params = make_params(kp, c_in=C_IN, kernel=3, c_out=16, cond_dim=COND,
                         y_dim=Y_DIM, made_hidden=128, seq_len=L)

    x = jax.random.normal(kx, (B, C_IN, L), jnp.float32)
    y = jax.random.normal(ky, (B, Y_DIM), jnp.float32)

    # Fused featurizer + flow path.
    nlp = flow_forward(params, x, y, is_feature=False, reduce=True)
    nlp = jax.block_until_ready(nlp)
    ref = jax.block_until_ready(reference_forward(params, x, y))
    assert nlp.shape == (B, 1), nlp.shape
    assert np.allclose(np.asarray(nlp), np.asarray(ref), rtol=1e-3, atol=1e-2), (
        np.max(np.abs(np.asarray(nlp) - np.asarray(ref))))

    # Feature-input (is_feature=True) path.
    cond = jax.random.normal(kc, (B, COND), jnp.float32)
    nlp2 = jax.block_until_ready(
        flow_forward(params, cond, y, is_feature=True, reduce=True))
    ref2 = jax.block_until_ready(reference_flow_nlp(params, cond, y))
    assert np.allclose(np.asarray(nlp2), np.asarray(ref2), rtol=1e-3, atol=1e-2), (
        np.max(np.abs(np.asarray(nlp2) - np.asarray(ref2))))

    print("KERNEL_OK")
</pallas_src>

<mosaic_0001>
module attributes {stable_mosaic.version = 11 : i64} {
  func.func @_fused_forward_kernel(%arg0: i32, %arg1: memref<72x8xf32, #tpu.memory_space<vmem>>, %arg2: memref<8x8xf32, #tpu.memory_space<vmem>>, %arg3: memref<256x72xf32, #tpu.memory_space<vmem>>, %arg4: memref<256x1xf32, #tpu.memory_space<vmem>>, %arg5: memref<32x256xf32, #tpu.memory_space<vmem>>, %arg6: memref<32x1xf32, #tpu.memory_space<vmem>>, %arg7: memref<128x8xf32, #tpu.memory_space<vmem>>, %arg8: memref<128x32xf32, #tpu.memory_space<vmem>>, %arg9: memref<128x1xf32, #tpu.memory_space<vmem>>, %arg10: memref<16x128xf32, #tpu.memory_space<vmem>>, %arg11: memref<16x1xf32, #tpu.memory_space<vmem>>, %arg12: memref<1x8xf32, #tpu.memory_space<vmem>>) attributes {dimension_semantics = [#tpu.dimension_semantics<parallel>], iteration_bounds = array<i64: 1>, scalar_prefetch = 0 : i64, scratch_operands = 0 : i64, tpu.core_type = #tpu.core_type<tc>, window_params = [{transform_indices = @transform_0, window_bounds = array<i64: 72, 8>}, {transform_indices = @transform_1, window_bounds = array<i64: 8, 8>}, {pipeline_mode = #tpu.pipeline_mode<synchronous>, transform_indices = @transform_2, window_bounds = array<i64: 256, 72>}, {pipeline_mode = #tpu.pipeline_mode<synchronous>, transform_indices = @transform_3, window_bounds = array<i64: 256, 1>}, {pipeline_mode = #tpu.pipeline_mode<synchronous>, transform_indices = @transform_4, window_bounds = array<i64: 32, 256>}, {pipeline_mode = #tpu.pipeline_mode<synchronous>, transform_indices = @transform_5, window_bounds = array<i64: 32, 1>}, {pipeline_mode = #tpu.pipeline_mode<synchronous>, transform_indices = @transform_6, window_bounds = array<i64: 128, 8>}, {pipeline_mode = #tpu.pipeline_mode<synchronous>, transform_indices = @transform_7, window_bounds = array<i64: 128, 32>}, {pipeline_mode = #tpu.pipeline_mode<synchronous>, transform_indices = @transform_8, window_bounds = array<i64: 128, 1>}, {pipeline_mode = #tpu.pipeline_mode<synchronous>, transform_indices = @transform_9, window_bounds = array<i64: 16, 128>}, {pipeline_mode = #tpu.pipeline_mode<synchronous>, transform_indices = @transform_10, window_bounds = array<i64: 16, 1>}, {transform_indices = @transform_11, window_bounds = array<i64: 1, 8>}]} {
    %c0 = arith.constant 0 : index
    %c0_0 = arith.constant 0 : index
    %0 = vector.load %arg3[%c0, %c0_0] : memref<256x72xf32, #tpu.memory_space<vmem>>, vector<256x72xf32>
    %c0_1 = arith.constant 0 : index
    %c0_2 = arith.constant 0 : index
    %1 = vector.load %arg1[%c0_1, %c0_2] : memref<72x8xf32, #tpu.memory_space<vmem>>, vector<72x8xf32>
    %cst = arith.constant dense<0.000000e+00> : vector<256x8xf32>
    %2 = tpu.matmul %0, %1, %cst {dimension_numbers = #tpu.dot_dimension_numbers<[1], [0], [0], [1], [0, 0, 1, 1], [], []>} : vector<256x72xf32>, vector<72x8xf32>, vector<256x8xf32> -> vector<256x8xf32>
    %c0_3 = arith.constant 0 : index
    %c0_4 = arith.constant 0 : index
    %3 = vector.load %arg4[%c0_3, %c0_4] : memref<256x1xf32, #tpu.memory_space<vmem>>, vector<256x1xf32>
    %4 = vector.broadcast %3 : vector<256x1xf32> to vector<256x8xf32>
    %5 = arith.addf %2, %4 : vector<256x8xf32>
    %cst_5 = arith.constant 0.000000e+00 : f32
    %6 = vector.broadcast %cst_5 : f32 to vector<256x8xf32>
    %7 = arith.maximumf %5, %6 : vector<256x8xf32>
    %c0_6 = arith.constant 0 : index
    %c0_7 = arith.constant 0 : index
    %8 = vector.load %arg5[%c0_6, %c0_7] : memref<32x256xf32, #tpu.memory_space<vmem>>, vector<32x256xf32>
    %cst_8 = arith.constant dense<0.000000e+00> : vector<32x8xf32>
    %9 = tpu.matmul %8, %7, %cst_8 {dimension_numbers = #tpu.dot_dimension_numbers<[1], [0], [0], [1], [0, 0, 1, 1], [], []>} : vector<32x256xf32>, vector<256x8xf32>, vector<32x8xf32> -> vector<32x8xf32>
    %c0_9 = arith.constant 0 : index
    %c0_10 = arith.constant 0 : index
    %10 = vector.load %arg6[%c0_9, %c0_10] : memref<32x1xf32, #tpu.memory_space<vmem>>, vector<32x1xf32>
    %11 = vector.broadcast %10 : vector<32x1xf32> to vector<32x8xf32>
    %12 = arith.addf %9, %11 : vector<32x8xf32>
    %c0_11 = arith.constant 0 : index
    %c0_12 = arith.constant 0 : index
    %13 = vector.load %arg2[%c0_11, %c0_12] : memref<8x8xf32, #tpu.memory_space<vmem>>, vector<8x8xf32>
    %c0_13 = arith.constant 0 : index
    %c0_14 = arith.constant 0 : index
    %14 = vector.load %arg7[%c0_13, %c0_14] : memref<128x8xf32, #tpu.memory_space<vmem>>, vector<128x8xf32>
    %c0_15 = arith.constant 0 : index
    %c0_16 = arith.constant 0 : index
    %15 = vector.load %arg8[%c0_15, %c0_16] : memref<128x32xf32, #tpu.memory_space<vmem>>, vector<128x32xf32>
    %c0_17 = arith.constant 0 : index
    %c0_18 = arith.constant 0 : index
    %16 = vector.load %arg9[%c0_17, %c0_18] : memref<128x1xf32, #tpu.memory_space<vmem>>, vector<128x1xf32>
    %c0_19 = arith.constant 0 : index
    %c0_20 = arith.constant 0 : index
    %17 = vector.load %arg10[%c0_19, %c0_20] : memref<16x128xf32, #tpu.memory_space<vmem>>, vector<16x128xf32>
    %c0_21 = arith.constant 0 : index
    %c0_22 = arith.constant 0 : index
    %18 = vector.load %arg11[%c0_21, %c0_22] : memref<16x1xf32, #tpu.memory_space<vmem>>, vector<16x1xf32>
    %cst_23 = arith.constant dense<0.000000e+00> : vector<128x8xf32>
    %19 = tpu.matmul %14, %13, %cst_23 {dimension_numbers = #tpu.dot_dimension_numbers<[1], [0], [0], [1], [0, 0, 1, 1], [], []>} : vector<128x8xf32>, vector<8x8xf32>, vector<128x8xf32> -> vector<128x8xf32>
    %cst_24 = arith.constant dense<0.000000e+00> : vector<128x8xf32>
    %20 = tpu.matmul %15, %12, %cst_24 {dimension_numbers = #tpu.dot_dimension_numbers<[1], [0], [0], [1], [0, 0, 1, 1], [], []>} : vector<128x32xf32>, vector<32x8xf32>, vector<128x8xf32> -> vector<128x8xf32>
    %21 = arith.addf %19, %20 : vector<128x8xf32>
    %22 = vector.broadcast %16 : vector<128x1xf32> to vector<128x8xf32>
    %23 = arith.addf %21, %22 : vector<128x8xf32>
    %cst_25 = arith.constant 0.000000e+00 : f32
    %24 = vector.broadcast %cst_25 : f32 to vector<128x8xf32>
    %25 = arith.maximumf %23, %24 : vector<128x8xf32>
    %cst_26 = arith.constant dense<0.000000e+00> : vector<16x8xf32>
    %26 = tpu.matmul %17, %25, %cst_26 {dimension_numbers = #tpu.dot_dimension_numbers<[1], [0], [0], [1], [0, 0, 1, 1], [], []>} : vector<16x128xf32>, vector<128x8xf32>, vector<16x8xf32> -> vector<16x8xf32>
    %27 = vector.broadcast %18 : vector<16x1xf32> to vector<16x8xf32>
    %28 = arith.addf %26, %27 : vector<16x8xf32>
    %29 = vector.extract_strided_slice %28 {offsets = [0, 0], sizes = [8, 8], strides = [1, 1]} : vector<16x8xf32> to vector<8x8xf32>
    %30 = vector.extract_strided_slice %28 {offsets = [8, 0], sizes = [8, 8], strides = [1, 1]} : vector<16x8xf32> to vector<8x8xf32>
    %31 = arith.subf %13, %29 : vector<8x8xf32>
    %cst_27 = arith.constant 0.000000e+00 : f32
    %32 = vector.broadcast %cst_27 : f32 to vector<8x8xf32>
    %33 = arith.subf %32, %30 : vector<8x8xf32>
    %34 = math.exp %33 : vector<8x8xf32>
    %35 = arith.mulf %31, %34 : vector<8x8xf32>
    %cst_28 = arith.constant -5.000000e-01 : f32
    %36 = vector.broadcast %cst_28 : f32 to vector<8x8xf32>
    %37 = arith.mulf %36, %35 : vector<8x8xf32>
    %38 = arith.mulf %37, %35 : vector<8x8xf32>
    %39 = arith.subf %38, %30 : vector<8x8xf32>
    %cst_29 = arith.constant dense<0.000000e+00> : vector<8xf32>
    %40 = vector.multi_reduction <add>, %39, %cst_29 [0] : vector<8x8xf32> to vector<8xf32>
    %41 = vector.shape_cast %40 : vector<8xf32> to vector<1x8xf32>
    %cst_30 = arith.constant 7.35150814 : f32
    %42 = vector.broadcast %cst_30 : f32 to vector<1x8xf32>
    %43 = arith.subf %42, %41 : vector<1x8xf32>
    %c0_31 = arith.constant 0 : index
    %c0_32 = arith.constant 0 : index
    %44 = vector.load %arg12[%c0_31, %c0_32] : memref<1x8xf32, #tpu.memory_space<vmem>>, vector<1x8xf32>
    tpu.vector_store %arg12[%c0_31, %c0_32], %43 {strides = array<i32>} : memref<1x8xf32, #tpu.memory_space<vmem>>, vector<1x8xf32>,
    return
  }
  func.func @transform_0(%arg0: i32) -> (i32, i32) {
    %c0_i32 = arith.constant 0 : i32
    %c0_i32_0 = arith.constant 0 : i32
    return %c0_i32, %arg0 : i32, i32
  }
  func.func @transform_1(%arg0: i32) -> (i32, i32) {
    %c0_i32 = arith.constant 0 : i32
    %c0_i32_0 = arith.constant 0 : i32
    return %c0_i32, %arg0 : i32, i32
  }
  func.func @transform_2(%arg0: i32) -> (i32, i32) {
    %c0_i32 = arith.constant 0 : i32
    %c0_i32_0 = arith.constant 0 : i32
    %c0_i32_1 = arith.constant 0 : i32
    return %c0_i32, %c0_i32_0 : i32, i32
  }
  func.func @transform_3(%arg0: i32) -> (i32, i32) {
    %c0_i32 = arith.constant 0 : i32
    %c0_i32_0 = arith.constant 0 : i32
    %c0_i32_1 = arith.constant 0 : i32
    return %c0_i32, %c0_i32_0 : i32, i32
  }
  func.func @transform_4(%arg0: i32) -> (i32, i32) {
    %c0_i32 = arith.constant 0 : i32
    %c0_i32_0 = arith.constant 0 : i32
    %c0_i32_1 = arith.constant 0 : i32
    return %c0_i32, %c0_i32_0 : i32, i32
  }
  func.func @transform_5(%arg0: i32) -> (i32, i32) {
    %c0_i32 = arith.constant 0 : i32
    %c0_i32_0 = arith.constant 0 : i32
    %c0_i32_1 = arith.constant 0 : i32
    return %c0_i32, %c0_i32_0 : i32, i32
  }
  func.func @transform_6(%arg0: i32) -> (i32, i32) {
    %c0_i32 = arith.constant 0 : i32
    %c0_i32_0 = arith.constant 0 : i32
    %c0_i32_1 = arith.constant 0 : i32
    return %c0_i32, %c0_i32_0 : i32, i32
  }
  func.func @transform_7(%arg0: i32) -> (i32, i32) {
    %c0_i32 = arith.constant 0 : i32
    %c0_i32_0 = arith.constant 0 : i32
    %c0_i32_1 = arith.constant 0 : i32
    return %c0_i32, %c0_i32_0 : i32, i32
  }
  func.func @transform_8(%arg0: i32) -> (i32, i32) {
    %c0_i32 = arith.constant 0 : i32
    %c0_i32_0 = arith.constant 0 : i32
    %c0_i32_1 = arith.constant 0 : i32
    return %c0_i32, %c0_i32_0 : i32, i32
  }
  func.func @transform_9(%arg0: i32) -> (i32, i32) {
    %c0_i32 = arith.constant 0 : i32
    %c0_i32_0 = arith.constant 0 : i32
    %c0_i32_1 = arith.constant 0 : i32
    return %c0_i32, %c0_i32_0 : i32, i32
  }
  func.func @transform_10(%arg0: i32) -> (i32, i32) {
    %c0_i32 = arith.constant 0 : i32
    %c0_i32_0 = arith.constant 0 : i32
    %c0_i32_1 = arith.constant 0 : i32
    return %c0_i32, %c0_i32_0 : i32, i32
  }
  func.func @transform_11(%arg0: i32) -> (i32, i32) {
    %c0_i32 = arith.constant 0 : i32
    %c0_i32_0 = arith.constant 0 : i32
    return %c0_i32, %arg0 : i32, i32
  }
}

</mosaic_0001>

<bundles_post_ra>
// kernel: tpu_custom_call.1
= control target key start
LH: loop header
LB: loop body
LE: loop exit
PB: predicated region body
PF: predicated region fallthrough
CT: control target
= control target key end

     0   :  { %v1910_v3 = vmov 0   ;;  %vm272_vm0 = vcmask 588800   ;;  %s2540_s0 = inlined_call_operand.vmem [shape: f32[72,8], index: 0, kind: input, shape index: {}]   ;;  %s2541_s1 = inlined_call_operand.vmem [shape: f32[8,8], index: 1, kind: input, shape index: {}]   ;;  %s2542_s2 = inlined_call_operand.vmem [shape: f32[256,72], index: 2, kind: input, shape index: {}]   ;;  %s2543_s3 = inlined_call_operand.vmem [shape: f32[256,1], index: 3, kind: input, shape index: {}]   ;;  %s2544_s4 = inlined_call_operand.vmem [shape: f32[32,256], index: 4, kind: input, shape index: {}]   ;;  %s2545_s5 = inlined_call_operand.vmem [shape: f32[32,1], index: 5, kind: input, shape index: {}]   ;;  %s2546_s6 = inlined_call_operand.vmem [shape: f32[128,8], index: 6, kind: input, shape index: {}]   ;;  %s2547_s7 = inlined_call_operand.vmem [shape: f32[128,32], index: 7, kind: input, shape index: {}]   ;;  %s2548_s8 = inlined_call_operand.vmem [shape: f32[128,1], index: 8, kind: input, shape index: {}]   ;;  %s2549_s9 = inlined_call_operand.vmem [shape: f32[16,128], index: 9, kind: input, shape index: {}]   ;;  %s2550_s10 = inlined_call_operand.vmem [shape: f32[16,1], index: 10, kind: input, shape index: {}]   ;;  %s2551_s11 = inlined_call_operand.hbm [shape: f32[1,8], index: 11, kind: output, shape index: {}]  }
   0x1   :  { %v96_v0 = vld [vmem:[%s2543_s3 + $0x80] sm:$0xff]  ;;  %1883 = vset.pattern.permute.xlu1 %v1910_v3  ;;  %1882 = vset.pattern.permute.xlu0 %v1910_v3  ;;  %v72_v4 = vld [vmem:[%s2540_s0 + $0x8] sm:$0xff]  ;;  %v73_v6 = vld [vmem:[%s2540_s0 + $0x10] sm:$0xff] }
   0x2   :  { %v80_v1 = vld [vmem:[%s2543_s3] sm:$0xff]  ;;  %194 = vperm.xlu0 %1882, %v96_v0   ;;  %v74_v7 = vld [vmem:[%s2540_s0 + $0x18] sm:$0xff]  ;;  %v97_v8 = vld [vmem:[%s2543_s3 + $0x88] sm:$0xff] }
   0x3   :  { %v71_v2 = vld [vmem:[%s2540_s0] sm:$0xff]  ;;  %114 = vperm.xlu1 %1883, %v80_v1   ;;  %v81_v9 = vld [vmem:[%s2543_s3 + $0x8] sm:$0xff]  ;;  %v1780_v10 = vpack.c.bf16 %v74_v7, %v73_v6  ;;  %v98_v14 = vld [vmem:[%s2543_s3 + $0x90] sm:$0xff] }
   0x4   :  { %v1776_v5 = vpack.c.bf16 %v72_v4, %v71_v2  ;;  %v75_v11 = vld [vmem:[%s2540_s0 + $0x20] sm:$0xff]  ;;  %v76_v12 = vld [vmem:[%s2540_s0 + $0x28] sm:$0xff]  ;;  %v99_v15 = vld [vmem:[%s2543_s3 + $0x98] sm:$0xff] }
   0x5   :  { %v39_v13 = vld [vmem:[%s2542_s2] sm:$0xff]  ;;  %v1784_v16 = vpack.c.bf16 %v76_v12, %v75_v11  ;;  %v77_v17 = vld [vmem:[%s2540_s0 + $0x30] sm:$0xff]  ;;  %v78_v18 = vld [vmem:[%s2540_s0 + $0x38] sm:$0xff] }
   0x6   :  { %1777 = vmatprep.subr.bf16.mxu0 %v1776_v5  ;;  %199 = vperm.xlu0 %1882, %v97_v8   ;;  %v82_v19 = vld [vmem:[%s2543_s3 + $0x10] sm:$0xff]  ;;  %v83_v20 = vld [vmem:[%s2543_s3 + $0x18] sm:$0xff]  ;;  %v1788_v21 = vpack.c.bf16 %v78_v18, %v77_v17  ;;  %v100_v22 = vld [vmem:[%s2543_s3 + $0xa0] sm:$0xff] }
   0x7   :  { %1779 = vmatpush3.bf16.msra.mxu0 %v1776_v5  ;;  %119 = vperm.xlu1 %1883, %v81_v9   ;;  %v101_v23 = vld [vmem:[%s2543_s3 + $0xa8] sm:$0xff]  ;;  %v79_v24 = vld [vmem:[%s2540_s0 + $0x40] sm:$0xff]  ;;  %v41_v28 = vld [vmem:[%s2542_s2 + $0x10] sm:$0xff] }
   0x8   :  { %1781 = vmatprep.subr.bf16.mxu0 %v1780_v10  ;;  %1635 = vmatprep.mubr.msk.f32.mxu0 %vm272_vm0, %v39_v13  ;;  %v40_v25 = vld [vmem:[%s2542_s2 + $0x8] sm:$0xff]  ;;  %v84_v26 = vld [vmem:[%s2543_s3 + $0x20] sm:$0xff]  ;;  %v42_v29 = vld [vmem:[%s2542_s2 + $0x18] sm:$0xff] }
   0x9   :  { %v85_v27 = vld [vmem:[%s2543_s3 + $0x28] sm:$0xff]  ;;  %v102_v30 = vld [vmem:[%s2543_s3 + $0xb0] sm:$0xff]  ;;  %v103_v31 = vld [vmem:[%s2543_s3 + $0xb8] sm:$0xff] }
   0xa   :  { %204 = vperm.xlu0 %1882, %v98_v14   ;;  %v43_v32 = vld [vmem:[%s2542_s2 + $0x20] sm:$0xff]  ;;  %v44_v33 = vld [vmem:[%s2542_s2 + $0x28] sm:$0xff]  ;;  %v86_v34 = vld [vmem:[%s2543_s3 + $0x30] sm:$0xff] }
   0xb   :  { %1783 = vmatpush3.bf16.msra.mxu0 %v1780_v10  ;;  %209 = vperm.xlu1 %1883, %v99_v15   ;;  %v87_v35 = vld [vmem:[%s2543_s3 + $0x38] sm:$0xff]  ;;  %v45_v36 = vld [vmem:[%s2542_s2 + $0x30] sm:$0xff]  ;;  %v104_v38 = vld [vmem:[%s2543_s3 + $0xc0] sm:$0xff] }
   0xc   :  { %1785 = vmatprep.subr.bf16.mxu0 %v1784_v16  ;;  %v46_v37 = vld [vmem:[%s2542_s2 + $0x38] sm:$0xff] }
   0xe   :  { %124 = vperm.xlu0 %1882, %v82_v19  }
   0xf   :  { %1787 = vmatpush3.bf16.msra.mxu0 %v1784_v16  ;;  %129 = vperm.xlu1 %1883, %v83_v20  }
  0x10   :  { %1789 = vmatprep.subr.bf16.mxu0 %v1788_v21 }
  0x12   :  { %214 = vperm.xlu0 %1882, %v100_v22  }
  0x13   :  { %1791 = vmatpush3.bf16.msra.mxu0 %v1788_v21  ;;  %219 = vperm.xlu1 %1883, %v101_v23  }
  0x14   :  { %1633 = vmatprep.subr.mxu0 %v79_v24 }
  0x16   :  { %134 = vperm.xlu0 %1882, %v84_v26  }
  0x17   :  { %1634 = vmatpush3.msra.mxu0 %v79_v24  ;;  %139 = vperm.xlu1 %1883, %v85_v27  }
  0x18   :  { %1636 = vmatmul.mubr.msk.f32.vlgmr.msra.gmra.mrb[0].mxu0 %vm272_vm0, %v40_v25 }
  0x19   :  { %1638 = vmatprep.mubr.msk.f32.mxu0 %vm272_vm0, %v41_v28 }
  0x1a   :  { %224 = vperm.xlu0 %1882, %v102_v30  }
  0x1b   :  { %229 = vperm.xlu1 %1883, %v103_v31  }
  0x1c   :  { %1639 = vmatmul.mubr.msk.f32.gmra.mrb[2].mxu0 %vm272_vm0, %v42_v29 }
  0x1d   :  { %1641 = vmatprep.mubr.msk.f32.mxu0 %vm272_vm0, %v43_v32 }
  0x1e   :  { %144 = vperm.xlu0 %1882, %v86_v34  }
  0x1f   :  { %149 = vperm.xlu1 %1883, %v87_v35  }
  0x20   :  { %1642 = vmatmul.mubr.msk.f32.gmra.mrb[4].mxu0 %vm272_vm0, %v44_v33 }
  0x21   :  { %1644 = vmatprep.mubr.msk.f32.mxu0 %vm272_vm0, %v45_v36 }
  0x22   :  { %16 = vsyncpa [#allocation3], 0  ;;  %v105_v39 = vld [vmem:[%s2543_s3 + $0xc8] sm:$0xff]  ;;  %v47_v40 = vld [vmem:[%s2542_s2 + $0x40] sm:$0xff]  ;;  %234 = vperm.xlu0 %1882, %v104_v38   ;;  %vm796_vm1 = vcmask 261120   ;;  %vm990_vm2 = vcmask 64512  }
  0x23   :  { %239 = vperm.xlu1 %1883, %v105_v39   ;;  %v48_v41 = vld [vmem:[%s2542_s2 + $0x48] sm:$0xff]  ;;  %v88_v42 = vld [vmem:[%s2543_s3 + $0x40] sm:$0xff]  ;;  %v49_v44 = vld [vmem:[%s2542_s2 + $0x50] sm:$0xff]  ;;  %vm1397_vm3 = vcmask 57344  }
  0x24   :  { %1645 = vmatmul.mubr.msk.f32.gmra.mrb[6].mxu0 %vm272_vm0, %v46_v37  ;;  %v89_v43 = vld [vmem:[%s2543_s3 + $0x48] sm:$0xff]  ;;  %v50_v45 = vld [vmem:[%s2542_s2 + $0x58] sm:$0xff]  ;;  %v106_v46 = vld [vmem:[%s2543_s3 + $0xd0] sm:$0xff] }
  0x25   :  { %1647 = vmatprep.mubr.msk.f32.mxu0 %vm272_vm0, %v47_v40  ;;  %v107_v47 = vld [vmem:[%s2543_s3 + $0xd8] sm:$0xff]  ;;  %v51_v48 = vld [vmem:[%s2542_s2 + $0x60] sm:$0xff]  ;;  %v52_v49 = vld [vmem:[%s2542_s2 + $0x68] sm:$0xff] }
  0x26   :  { %154 = vperm.xlu0 %1882, %v88_v42   ;;  %v90_v50 = vld [vmem:[%s2543_s3 + $0x50] sm:$0xff]  ;;  %v91_v51 = vld [vmem:[%s2543_s3 + $0x58] sm:$0xff]  ;;  %v108_v54 = vld [vmem:[%s2543_s3 + $0xe0] sm:$0xff] }
  0x27   :  { %159 = vperm.xlu1 %1883, %v89_v43   ;;  %v53_v52 = vld [vmem:[%s2542_s2 + $0x70] sm:$0xff]  ;;  %v54_v53 = vld [vmem:[%s2542_s2 + $0x78] sm:$0xff]  ;;  %v109_v55 = vld [vmem:[%s2543_s3 + $0xe8] sm:$0xff] }
  0x28   :  { %1648 = vmatmul.mubr.msk.f32.gmra.mrb[8].mxu0 %vm272_vm0, %v48_v41  ;;  %v55_v56 = vld [vmem:[%s2542_s2 + $0x80] sm:$0xff]  ;;  %v56_v57 = vld [vmem:[%s2542_s2 + $0x88] sm:$0xff]  ;;  %v57_v60 = vld [vmem:[%s2542_s2 + $0x90] sm:$0xff] }
  0x29   :  { %1650 = vmatprep.mubr.msk.f32.mxu0 %vm272_vm0, %v49_v44  ;;  %v92_v58 = vld [vmem:[%s2543_s3 + $0x60] sm:$0xff]  ;;  %v93_v59 = vld [vmem:[%s2543_s3 + $0x68] sm:$0xff]  ;;  %v58_v61 = vld [vmem:[%s2542_s2 + $0x98] sm:$0xff] }
  0x2a   :  { %244 = vperm.xlu0 %1882, %v106_v46   ;;  %v110_v62 = vld [vmem:[%s2543_s3 + $0xf0] sm:$0xff]  ;;  %v111_v63 = vld [vmem:[%s2543_s3 + $0xf8] sm:$0xff]  ;;  %v59_v0 = vld [vmem:[%s2542_s2 + $0xa0] sm:$0xff] }
  0x2b   :  { %249 = vperm.xlu1 %1883, %v107_v47   ;;  %v60_v1 = vld [vmem:[%s2542_s2 + $0xa8] sm:$0xff]  ;;  %v94_v2 = vld [vmem:[%s2543_s3 + $0x70] sm:$0xff]  ;;  %v95_v3 = vld [vmem:[%s2543_s3 + $0x78] sm:$0xff] }
  0x2c   :  { %1651 = vmatmul.mubr.msk.f32.gmra.mrb[10].mxu0 %vm272_vm0, %v50_v45  ;;  %v61_v4 = vld [vmem:[%s2542_s2 + $0xb0] sm:$0xff]  ;;  %v62_v5 = vld [vmem:[%s2542_s2 + $0xb8] sm:$0xff]  ;;  %v634_v6 = vld [vmem:[%s2545_s5] sm:$0xff] }
  0x2d   :  { %1653 = vmatprep.mubr.msk.f32.mxu0 %vm272_vm0, %v51_v48  ;;  %v635_v7 = vld [vmem:[%s2545_s5 + $0x8] sm:$0xff]  ;;  %v63_v8 = vld [vmem:[%s2542_s2 + $0xc0] sm:$0xff]  ;;  %v636_v10 = vld [vmem:[%s2545_s5 + $0x10] sm:$0xff] }
  0x2e   :  { %164 = vperm.xlu0 %1882, %v90_v50   ;;  %v64_v9 = vld [vmem:[%s2542_s2 + $0xc8] sm:$0xff]  ;;  %v637_v11 = vld [vmem:[%s2545_s5 + $0x18] sm:$0xff]  ;;  %v65_v12 = vld [vmem:[%s2542_s2 + $0xd0] sm:$0xff] }
  0x2f   :  { %169 = vperm.xlu1 %1883, %v91_v51   ;;  %v66_v13 = vld [vmem:[%s2542_s2 + $0xd8] sm:$0xff]  ;;  %v776_v14 = vld [vmem:[%s2548_s8] sm:$0xff]  ;;  %v777_v15 = vld [vmem:[%s2548_s8 + $0x8] sm:$0xff] }
  0x30   :  { %1654 = vmatmul.mubr.msk.f32.gmra.mrb[12].mxu0 %vm272_vm0, %v52_v49  ;;  %v67_v16 = vld [vmem:[%s2542_s2 + $0xe0] sm:$0xff]  ;;  %v68_v17 = vld [vmem:[%s2542_s2 + $0xe8] sm:$0xff]  ;;  %v778_v18 = vld [vmem:[%s2548_s8 + $0x10] sm:$0xff] }
  0x31   :  { %1656 = vmatprep.mubr.msk.f32.mxu0 %vm272_vm0, %v53_v52  ;;  %v779_v19 = vld [vmem:[%s2548_s8 + $0x18] sm:$0xff]  ;;  %v69_v20 = vld [vmem:[%s2542_s2 + $0xf0] sm:$0xff]  ;;  %v780_v22 = vld [vmem:[%s2548_s8 + $0x20] sm:$0xff] }
  0x32   :  { %254 = vperm.xlu0 %1882, %v108_v54   ;;  %v70_v21 = vld [vmem:[%s2542_s2 + $0xf8] sm:$0xff]  ;;  %v781_v23 = vld [vmem:[%s2548_s8 + $0x28] sm:$0xff]  ;;  %v782_v24 = vld [vmem:[%s2548_s8 + $0x30] sm:$0xff] }
  0x33   :  { %259 = vperm.xlu1 %1883, %v109_v55   ;;  %v783_v25 = vld [vmem:[%s2548_s8 + $0x38] sm:$0xff]  ;;  %v784_v26 = vld [vmem:[%s2548_s8 + $0x40] sm:$0xff]  ;;  %v785_v27 = vld [vmem:[%s2548_s8 + $0x48] sm:$0xff] }
  0x34   :  { %1657 = vmatmul.mubr.msk.f32.gmra.mrb[14].mxu0 %vm272_vm0, %v54_v53  ;;  %v786_v28 = vld [vmem:[%s2548_s8 + $0x50] sm:$0xff]  ;;  %v787_v29 = vld [vmem:[%s2548_s8 + $0x58] sm:$0xff]  ;;  %v788_v30 = vld [vmem:[%s2548_s8 + $0x60] sm:$0xff] }
  0x35   :  { %1659 = vmatprep.mubr.msk.f32.mxu0 %vm272_vm0, %v55_v56  ;;  %v789_v31 = vld [vmem:[%s2548_s8 + $0x68] sm:$0xff]  ;;  %v790_v32 = vld [vmem:[%s2548_s8 + $0x70] sm:$0xff]  ;;  %v791_v33 = vld [vmem:[%s2548_s8 + $0x78] sm:$0xff] }
  0x36   :  { %174 = vperm.xlu0 %1882, %v92_v58   ;;  %v795_v34 = vld [vmem:[%s2550_s10 + $0x8] sm:$0xff]  ;;  %v794_v35 = vld [vmem:[%s2550_s10] sm:$0xff] }
  0x37   :  { %179 = vperm.xlu1 %1883, %v93_v59   ;;  %v627_v38 = vld [vmem:[%s2544_s4 + $0x8] sm:$0xff] }
  0x38   :  { %1660 = vmatmul.mubr.msk.f32.gmra.mrb[16].mxu0 %vm272_vm0, %v56_v57  ;;  %722 = vmatprep.mubr.f32.mxu1 %v627_v38 }
  0x39   :  { %1662 = vmatprep.mubr.msk.f32.mxu0 %vm272_vm0, %v57_v60 }
  0x3a   :  { %264 = vperm.xlu0 %1882, %v110_v62  }
  0x3b   :  { %269 = vperm.xlu1 %1883, %v111_v63  }
  0x3c   :  { %1663 = vmatmul.mubr.msk.f32.gmra.mrb[18].mxu0 %vm272_vm0, %v58_v61 }
  0x3d   :  { %1665 = vmatprep.mubr.msk.f32.mxu0 %vm272_vm0, %v59_v0 }
  0x3e   :  { %184 = vperm.xlu0 %1882, %v94_v2  }
  0x3f   :  { %189 = vperm.xlu1 %1883, %v95_v3  }
  0x40   :  { %1666 = vmatmul.mubr.msk.f32.gmra.mrb[20].mxu0 %vm272_vm0, %v60_v1 }
  0x41   :  { %1668 = vmatprep.mubr.msk.f32.mxu0 %vm272_vm0, %v61_v4 }
  0x42   :  { %640 = vperm.xlu0 %1882, %v634_v6  }
  0x43   :  { %645 = vperm.xlu1 %1883, %v635_v7  }
  0x44   :  { %1669 = vmatmul.mubr.msk.f32.gmra.mrb[22].mxu0 %vm272_vm0, %v62_v5 }
  0x45   :  { %1671 = vmatprep.mubr.msk.f32.mxu0 %vm272_vm0, %v63_v8 }
  0x46   :  { %650 = vperm.xlu0 %1882, %v636_v10  }
  0x47   :  { %655 = vperm.xlu1 %1883, %v637_v11  }
  0x48   :  { %1672 = vmatmul.mubr.msk.f32.gmra.mrb[24].mxu0 %vm272_vm0, %v64_v9 }
  0x49   :  { %1674 = vmatprep.mubr.msk.f32.mxu0 %vm272_vm0, %v65_v12 }
  0x4a   :  { %1186 = vperm.xlu0 %1882, %v776_v14  }
  0x4b   :  { %1191 = vperm.xlu1 %1883, %v777_v15  }
  0x4c   :  { %1675 = vmatmul.mubr.msk.f32.gmra.mrb[26].mxu0 %vm272_vm0, %v66_v13 }
  0x4d   :  { %1677 = vmatprep.mubr.msk.f32.mxu0 %vm272_vm0, %v67_v16 }
  0x4e   :  { %1196 = vperm.xlu0 %1882, %v778_v18  }
  0x4f   :  { %1201 = vperm.xlu1 %1883, %v779_v19  }
  0x50   :  { %1678 = vmatmul.mubr.msk.f32.gmra.mrb[28].mxu0 %vm272_vm0, %v68_v17 }
  0x51   :  { %1680 = vmatprep.mubr.msk.f32.mxu0 %vm272_vm0, %v69_v20 }
  0x52   :  { %1206 = vperm.xlu0 %1882, %v780_v22  }
  0x53   :  { %1211 = vperm.xlu1 %1883, %v781_v23  }
  0x54   :  { %1681 = vmatmul.mubr.msk.f32.gmra.mrb[30].mxu0 %vm272_vm0, %v70_v21 }
  0x56   :  { %1216 = vperm.xlu0 %1882, %v782_v24  }
  0x57   :  { %1221 = vperm.xlu1 %1883, %v783_v25  }
  0x5a   :  { %1226 = vperm.xlu0 %1882, %v784_v26  }
  0x5b   :  { %1231 = vperm.xlu1 %1883, %v785_v27  }
  0x5e   :  { %1236 = vperm.xlu0 %1882, %v786_v28  }
  0x5f   :  { %1241 = vperm.xlu1 %1883, %v787_v29  }
  0x62   :  { %1246 = vperm.xlu0 %1882, %v788_v30  }
  0x63   :  { %1251 = vperm.xlu1 %1883, %v789_v31  }
  0x66   :  { %1256 = vperm.xlu0 %1882, %v790_v32  }
  0x67   :  { %1261 = vperm.xlu1 %1883, %v791_v33  }
  0x6a   :  { %1303 = vperm.xlu0 %1882, %v795_v34  }
  0x6b   :  { %1298 = vperm.xlu1 %1883, %v794_v35  }
  0x81   :  { %v2289_v37 = vpop.permute.xlu0 %194 }
  0x82   :  { %v115_v36 = vpop.permute.xlu1 %114 }
  0x85   :  { %v2294_v40 = vpop.permute.xlu0 %199 }
  0x86   :  { %v120_v39 = vpop.permute.xlu1 %119 }
  0x89   :  { %v2298_v42 = vpop.permute.xlu0 %204 }
  0x8a   :  { %v2296_v41 = vpop.permute.xlu1 %209 }
  0x8d   :  { %v125_v44 = vpop.permute.xlu0 %124 }
  0x8e   :  { %v130_v43 = vpop.permute.xlu1 %129 }
  0x91   :  { %v2302_v46 = vpop.permute.xlu0 %214 }
  0x92   :  { %v2300_v45 = vpop.permute.xlu1 %219 }
  0x95   :  { %v135_v48 = vpop.permute.xlu0 %134 }
  0x96   :  { %v140_v47 = vpop.permute.xlu1 %139 }
  0x99   :  { %v2306_v50 = vpop.permute.xlu0 %224 }
  0x9a   :  { %v2304_v49 = vpop.permute.xlu1 %229 }
  0x9d   :  { %v145_v52 = vpop.permute.xlu0 %144 }
  0x9e   :  { %v150_v51 = vpop.permute.xlu1 %149 }
  0xa1   :  { %v2310_v54 = vpop.permute.xlu0 %234 }
  0xa2   :  { %v2308_v53 = vpop.permute.xlu1 %239 }
  0xa5   :  { %v155_v56 = vpop.permute.xlu0 %154 }
  0xa6   :  { %v160_v55 = vpop.permute.xlu1 %159 }
  0xa9   :  { %v2314_v58 = vpop.permute.xlu0 %244 }
  0xaa   :  { %v2312_v57 = vpop.permute.xlu1 %249 }
  0xad   :  { %v165_v3 = vpop.permute.xlu0 %164 }
  0xae   :  { %v170_v0 = vpop.permute.xlu1 %169 }
  0xb1   :  { %v2322_v16 = vpop.permute.xlu0 %254 }
  0xb2   :  { %v2318_v13 = vpop.permute.xlu1 %259 }
  0xb5   :  { %v175_v28 = vpop.permute.xlu0 %174 }
  0xb6   :  { %v180_v25 = vpop.permute.xlu1 %179 }
  0xeb   :  { %v1637_v59 = vpop.f32.mrb[0].mxu0 }
  0xec   :  { %v441_v60 = vadd.f32 %v1637_v59, %v120_v39  ;;  %v435_v61 = vpop.f32.mrb[1].mxu0  ;;  %v2328_v39 = vpop.permute.xlu1 %269 }
  0xed   :  { %v436_v62 = vadd.f32 %v435_v61, %v115_v36 }
  0xee   :  { %v595_v63 = vmax.f32 %v441_v60, 0.0 }
  0xef   :  { %v594_v1 = vmax.f32 %v436_v62, 0.0  ;;  %v1640_v2 = vpop.f32.mrb[2].mxu0 }
  0xf0   :  { %v451_v4 = vadd.f32 %v1640_v2, %v130_v43  ;;  %v445_v5 = vpop.f32.mrb[3].mxu0  ;;  %v190_v62 = vpop.permute.xlu1 %189 }
  0xf1   :  { %v446_v6 = vadd.f32 %v445_v5, %v125_v44  ;;  %v2316_v7 = vpack.c.bf16 %v595_v63, %v594_v1 }
  0xf2   :  { %v597_v8 = vmax.f32 %v451_v4, 0.0 }
  0xf3   :  { %v596_v9 = vmax.f32 %v446_v6, 0.0  ;;  %v1643_v10 = vpop.f32.mrb[4].mxu0 }
  0xf4   :  { %v461_v11 = vadd.f32 %v1643_v10, %v140_v47  ;;  %v455_v12 = vpop.f32.mrb[5].mxu0  ;;  %v2332_v47 = vpop.permute.xlu0 %264 }
  0xf5   :  { %v2320_v14 = vpack.c.bf16 %v597_v8, %v596_v9  ;;  %v456_v15 = vadd.f32 %v455_v12, %v135_v48 }
  0xf6   :  { %v599_v17 = vmax.f32 %v461_v11, 0.0 }
  0xf7   :  { %v598_v18 = vmax.f32 %v456_v15, 0.0  ;;  %v1646_v19 = vpop.f32.mrb[6].mxu0 }
  0xf8   :  { %v471_v20 = vadd.f32 %v1646_v19, %v150_v51  ;;  %v465_v21 = vpop.f32.mrb[7].mxu0  ;;  %v185_v1 = vpop.permute.xlu0 %184 }
  0xf9   :  { %v2324_v22 = vpack.c.bf16 %v599_v17, %v598_v18  ;;  %v466_v23 = vadd.f32 %v465_v21, %v145_v52 }
  0xfa   :  { %v601_v24 = vmax.f32 %v471_v20, 0.0 }
  0xfb   :  { %v600_v26 = vmax.f32 %v466_v23, 0.0  ;;  %v1649_v27 = vpop.f32.mrb[8].mxu0 }
  0xfc   :  { %v481_v29 = vadd.f32 %v1649_v27, %v160_v55  ;;  %v475_v30 = vpop.f32.mrb[9].mxu0 }
  0xfd   :  { %v2326_v31 = vpack.c.bf16 %v601_v24, %v600_v26  ;;  %v476_v32 = vadd.f32 %v475_v30, %v155_v56 }
  0xfe   :  { %v603_v33 = vmax.f32 %v481_v29, 0.0 }
  0xff   :  { %v602_v34 = vmax.f32 %v476_v32, 0.0  ;;  %v1652_v35 = vpop.f32.mrb[10].mxu0 }
 0x100   :  { %v491_v36 = vadd.f32 %v1652_v35, %v170_v0  ;;  %v485_v38 = vpop.f32.mrb[11].mxu0 }
 0x101   :  { %v2330_v43 = vpack.c.bf16 %v603_v33, %v602_v34  ;;  %v486_v44 = vadd.f32 %v485_v38, %v165_v3 }
 0x102   :  { %v605_v48 = vmax.f32 %v491_v36, 0.0 }
 0x103   :  { %v604_v51 = vmax.f32 %v486_v44, 0.0  ;;  %v1655_v52 = vpop.f32.mrb[12].mxu0 }
 0x104   :  { %v501_v55 = vadd.f32 %v1655_v52, %v180_v25  ;;  %v495_v59 = vpop.f32.mrb[13].mxu0 }
 0x105   :  { %v2334_v60 = vpack.c.bf16 %v605_v48, %v604_v51  ;;  %v496_v56 = vadd.f32 %v495_v59, %v175_v28 }
 0x106   :  { %v607_v61 = vmax.f32 %v501_v55, 0.0 }
 0x107   :  { %v606_v63 = vmax.f32 %v496_v56, 0.0  ;;  %v1658_v0 = vpop.f32.mrb[14].mxu0 }
 0x108   :  { %v511_v2 = vadd.f32 %v1658_v0, %v190_v62  ;;  %v505_v4 = vpop.f32.mrb[15].mxu0 }
 0x109   :  { %v2336_v5 = vpack.c.bf16 %v607_v61, %v606_v63  ;;  %v506_v3 = vadd.f32 %v505_v4, %v185_v1 }
 0x10a   :  { %v609_v6 = vmax.f32 %v511_v2, 0.0 }
 0x10b   :  { %v608_v8 = vmax.f32 %v506_v3, 0.0  ;;  %v1661_v9 = vpop.f32.mrb[16].mxu0 }
 0x10c   :  { %v521_v10 = vadd.f32 %v1661_v9, %v2294_v40  ;;  %v515_v11 = vpop.f32.mrb[17].mxu0  ;;  %v760_v9 = vld [vmem:[%s2547_s7] sm:$0xff] }
 0x10d   :  { %v2339_v12 = vpack.c.bf16 %v609_v6, %v608_v8  ;;  %v516_v15 = vadd.f32 %v515_v11, %v2289_v37  ;;  %v633_v6 = vld [vmem:[%s2544_s4 + $0x38] sm:$0xff]  ;;  %v632_v8 = vld [vmem:[%s2544_s4 + $0x30] sm:$0xff] }
 0x10e   :  { %v611_v17 = vmax.f32 %v521_v10, 0.0 }
 0x10f   :  { %v610_v18 = vmax.f32 %v516_v15, 0.0  ;;  %v1664_v19 = vpop.f32.mrb[18].mxu0 }
 0x110   :  { %v531_v20 = vadd.f32 %v1664_v19, %v2296_v41  ;;  %v525_v21 = vpop.f32.mrb[19].mxu0  ;;  %v641_v19 = vpop.permute.xlu0 %640 }
 0x111   :  { %v526_v23 = vadd.f32 %v525_v21, %v2298_v42  ;;  %v1792_v24 = vpack.c.bf16 %v611_v17, %v610_v18 }
 0x112   :  { %v613_v25 = vmax.f32 %v531_v20, 0.0  ;;  %v646_v20 = vpop.permute.xlu1 %645 }
 0x113   :  { %v612_v26 = vmax.f32 %v526_v23, 0.0  ;;  %v1667_v27 = vpop.f32.mrb[20].mxu0  ;;  %1793 = vmatprep.subr.bf16.mxu1 %v1792_v24 }
 0x114   :  { %v541_v40 = vadd.f32 %v1667_v27, %v2300_v45  ;;  %v535_v28 = vpop.f32.mrb[21].mxu0  ;;  %1795 = vmatpush3.bf16.msra.mxu1 %v2316_v7 }
 0x115   :  { %v1796_v29 = vpack.c.bf16 %v613_v25, %v612_v26  ;;  %v536_v37 = vadd.f32 %v535_v28, %v2302_v46 }
 0x116   :  { %v615_v30 = vmax.f32 %v541_v40, 0.0 }
 0x117   :  { %v614_v32 = vmax.f32 %v536_v37, 0.0  ;;  %v1670_v33 = vpop.f32.mrb[22].mxu0  ;;  %1797 = vmatprep.subr.bf16.mxu1 %v1796_v29  ;;  %v651_v37 = vpop.permute.xlu0 %650 }
 0x118   :  { %v551_v41 = vadd.f32 %v1670_v33, %v2304_v49  ;;  %v545_v42 = vpop.f32.mrb[23].mxu0  ;;  %1799 = vmatpush3.bf16.msra.mxu1 %v2320_v14 }
 0x119   :  { %v1800_v34 = vpack.c.bf16 %v615_v30, %v614_v32  ;;  %v546_v35 = vadd.f32 %v545_v42, %v2306_v50  ;;  %v656_v30 = vpop.permute.xlu1 %655  ;;  %v2392_v42 = vld [vmem:[%s2541_s1] sm:$0xff] }
 0x11a   :  { %v617_v36 = vmax.f32 %v551_v41, 0.0 }
 0x11b   :  { %v616_v45 = vmax.f32 %v546_v35, 0.0  ;;  %v1673_v38 = vpop.f32.mrb[24].mxu0  ;;  %1801 = vmatprep.subr.bf16.mxu1 %v1800_v34  ;;  %v761_v34 = vld [vmem:[%s2547_s7 + $0x8] sm:$0xff]  ;;  %v762_v35 = vld [vmem:[%s2547_s7 + $0x10] sm:$0xff] }
 0x11c   :  { %v561_v7 = vadd.f32 %v1673_v38, %v2308_v53  ;;  %v555_v44 = vpop.f32.mrb[25].mxu0  ;;  %1803 = vmatpush3.bf16.msra.mxu1 %v2324_v22  ;;  %v765_v38 = vld [vmem:[%s2547_s7 + $0x28] sm:$0xff] }
 0x11d   :  { %v1804_v46 = vpack.c.bf16 %v617_v36, %v616_v45  ;;  %v556_v48 = vadd.f32 %v555_v44, %v2310_v54  ;;  %v763_v36 = vld [vmem:[%s2547_s7 + $0x18] sm:$0xff]  ;;  %v764_v45 = vld [vmem:[%s2547_s7 + $0x20] sm:$0xff] }
 0x11e   :  { %v619_v51 = vmax.f32 %v561_v7, 0.0  ;;  %v766_v7 = vld [vmem:[%s2547_s7 + $0x30] sm:$0xff]  ;;  %v767_v44 = vld [vmem:[%s2547_s7 + $0x38] sm:$0xff] }
 0x11f   :  { %v618_v49 = vmax.f32 %v556_v48, 0.0  ;;  %v1676_v52 = vpop.f32.mrb[26].mxu0  ;;  %1805 = vmatprep.subr.bf16.mxu1 %v1804_v46  ;;  %v768_v46 = vld [vmem:[%s2547_s7 + $0x40] sm:$0xff]  ;;  %v769_v48 = vld [vmem:[%s2547_s7 + $0x48] sm:$0xff] }
 0x120   :  { %v571_v14 = vadd.f32 %v1676_v52, %v2312_v57  ;;  %v565_v55 = vpop.f32.mrb[27].mxu0  ;;  %1807 = vmatpush3.bf16.msra.mxu1 %v2326_v31  ;;  %v772_v52 = vld [vmem:[%s2547_s7 + $0x60] sm:$0xff] }
 0x121   :  { %v1808_v50 = vpack.c.bf16 %v619_v51, %v618_v49  ;;  %v566_v59 = vadd.f32 %v565_v55, %v2314_v58  ;;  %v770_v51 = vld [vmem:[%s2547_s7 + $0x50] sm:$0xff]  ;;  %v771_v49 = vld [vmem:[%s2547_s7 + $0x58] sm:$0xff] }
 0x122   :  { %v621_v56 = vmax.f32 %v571_v14, 0.0  ;;  %v773_v14 = vld [vmem:[%s2547_s7 + $0x68] sm:$0xff]  ;;  %v774_v55 = vld [vmem:[%s2547_s7 + $0x70] sm:$0xff] }
 0x123   :  { %v620_v53 = vmax.f32 %v566_v59, 0.0  ;;  %v1679_v61 = vpop.f32.mrb[28].mxu0  ;;  %1809 = vmatprep.subr.bf16.mxu1 %v1808_v50  ;;  %v775_v50 = vld [vmem:[%s2547_s7 + $0x78] sm:$0xff]  ;;  %v744_v59 = vld [vmem:[%s2546_s6] sm:$0xff] }
 0x124   :  { %v581_v22 = vadd.f32 %v1679_v61, %v2318_v13  ;;  %v575_v62 = vpop.f32.mrb[29].mxu0  ;;  %1811 = vmatpush3.bf16.msra.mxu1 %v2330_v43  ;;  %v747_v61 = vld [vmem:[%s2546_s6 + $0x18] sm:$0xff] }
 0x125   :  { %v1812_v54 = vpack.c.bf16 %v621_v56, %v620_v53  ;;  %v576_v63 = vadd.f32 %v575_v62, %v2322_v16  ;;  %v626_v16 = vld [vmem:[%s2544_s4] sm:$0xff]  ;;  %v745_v56 = vld [vmem:[%s2546_s6 + $0x8] sm:$0xff]  ;;  %v746_v53 = vld [vmem:[%s2546_s6 + $0x10] sm:$0xff] }
 0x126   :  { %v623_v0 = vmax.f32 %v581_v22, 0.0  ;;  %v748_v22 = vld [vmem:[%s2546_s6 + $0x20] sm:$0xff]  ;;  %v749_v62 = vld [vmem:[%s2546_s6 + $0x28] sm:$0xff] }
 0x127   :  { %v622_v57 = vmax.f32 %v576_v63, 0.0  ;;  %v1682_v1 = vpop.f32.mrb[30].mxu0  ;;  %1813 = vmatprep.subr.bf16.mxu1 %v1812_v54  ;;  %v750_v54 = vld [vmem:[%s2546_s6 + $0x30] sm:$0xff]  ;;  %v751_v63 = vld [vmem:[%s2546_s6 + $0x38] sm:$0xff] }
 0x128   :  { %v591_v31 = vadd.f32 %v1682_v1, %v2328_v39  ;;  %v585_v2 = vpop.f32.mrb[31].mxu0  ;;  %1815 = vmatpush3.bf16.msra.mxu1 %v2334_v60  ;;  %v629_v39 = vld [vmem:[%s2544_s4 + $0x18] sm:$0xff]  ;;  %v631_v60 = vld [vmem:[%s2544_s4 + $0x28] sm:$0xff]  ;;  %v754_v1 = vld [vmem:[%s2546_s6 + $0x50] sm:$0xff] }
 0x129   :  { %v1816_v58 = vpack.c.bf16 %v623_v0, %v622_v57  ;;  %v586_v4 = vadd.f32 %v585_v2, %v2332_v47  ;;  %v628_v47 = vld [vmem:[%s2544_s4 + $0x10] sm:$0xff]  ;;  %v752_v0 = vld [vmem:[%s2546_s6 + $0x40] sm:$0xff]  ;;  %v753_v57 = vld [vmem:[%s2546_s6 + $0x48] sm:$0xff] }
 0x12a   :  { %v625_v3 = vmax.f32 %v591_v31, 0.0  ;;  %v755_v31 = vld [vmem:[%s2546_s6 + $0x58] sm:$0xff]  ;;  %v756_v2 = vld [vmem:[%s2546_s6 + $0x60] sm:$0xff] }
 0x12b   :  { %v624_v13 = vmax.f32 %v586_v4, 0.0  ;;  %1817 = vmatprep.subr.bf16.mxu1 %v1816_v58  ;;  %v757_v58 = vld [vmem:[%s2546_s6 + $0x68] sm:$0xff]  ;;  %v758_v4 = vld [vmem:[%s2546_s6 + $0x70] sm:$0xff] }
 0x12c   :  { %1819 = vmatpush3.bf16.msra.mxu1 %v2336_v5  ;;  %v630_v5 = vld [vmem:[%s2544_s4 + $0x20] sm:$0xff] }
 0x12d   :  { %v1820_v43 = vpack.c.bf16 %v625_v3, %v624_v13  ;;  %v759_v3 = vld [vmem:[%s2546_s6 + $0x78] sm:$0xff]  ;;  %v792_v13 = vld [vmem:[%s2549_s9] sm:$0xff] }
 0x12e   :  { %1773 = vmatprep.mubr.f32.mxu0 %v792_v13 }
 0x12f   :  { %1821 = vmatprep.subr.bf16.mxu1 %v1820_v43  ;;  %v1192_v43 = vpop.permute.xlu1 %1191 }
 0x130   :  { %1823 = vmatpush3.bf16.msra.mxu1 %v2339_v12 }
 0x133   :  { %723 = vmatmul.mubr.f32.vlgmr.msra.gmra.mrb[0].mxu1 %v626_v16  ;;  %v1187_v16 = vpop.permute.xlu0 %1186 }
 0x134   :  { %727 = vmatprep.mubr.f32.mxu1 %v629_v39  ;;  %v1202_v39 = vpop.permute.xlu1 %1201 }
 0x137   :  { %728 = vmatmul.mubr.f32.gmra.mrb[2].mxu1 %v628_v47  ;;  %v1197_v47 = vpop.permute.xlu0 %1196 }
 0x138   :  { %732 = vmatprep.mubr.f32.mxu1 %v631_v60  ;;  %v1212_v60 = vpop.permute.xlu1 %1211 }
 0x13b   :  { %733 = vmatmul.mubr.f32.gmra.mrb[4].mxu1 %v630_v5  ;;  %v1207_v5 = vpop.permute.xlu0 %1206 }
 0x13c   :  { %737 = vmatprep.mubr.f32.mxu1 %v633_v6 }
 0x13f   :  { %738 = vmatmul.mubr.f32.gmra.mrb[6].mxu1 %v632_v8 }
 0x140   :  { %1691 = vmatprep.mubr.msk.f32.mxu1 %vm796_vm1, %v760_v9 }
 0x206   :  { %v1550_v10 = vpop.f32.mrb[0].mxu1 }
 0x207   :  { %v1551_v11 = vpop.f32.mrb[1].mxu1 }
 0x208   :  { %v1552_v12 = vadd.f32 %v1551_v11, %v1550_v10 }
 0x20a   :  { %v1553_v15 = vpop.f32.mrb[2].mxu1  ;;  %v725_v21 = vadd.f32 %v1552_v12, %v641_v19  ;;  %v1222_v12 = vpop.permute.xlu1 %1221 }
 0x20b   :  { %v1554_v17 = vpop.f32.mrb[3].mxu1 }
 0x20c   :  { %v1555_v18 = vadd.f32 %v1554_v17, %v1553_v15 }
 0x20e   :  { %v730_v23 = vadd.f32 %v1555_v18, %v646_v20  ;;  %v1556_v24 = vpop.f32.mrb[4].mxu1  ;;  %v1217_v18 = vpop.permute.xlu0 %1216 }
 0x20f   :  { %v1557_v25 = vpop.f32.mrb[5].mxu1 }
 0x210   :  { %v1558_v26 = vadd.f32 %v1557_v25, %v1556_v24  ;;  %v1824_v27 = vpack.c.bf16 %v730_v23, %v725_v21 }
 0x212   :  { %v1559_v40 = vpop.f32.mrb[6].mxu1  ;;  %1825 = vmatprep.subr.bf16.mxu1 %v1824_v27  ;;  %v735_v32 = vadd.f32 %v1558_v26, %v651_v37 }
 0x213   :  { %v1560_v28 = vpop.f32.mrb[7].mxu1  ;;  %1827 = vmatpush3.bf16.msra.mxu1 %v1824_v27 }
 0x214   :  { %v1561_v29 = vadd.f32 %v1560_v28, %v1559_v40  ;;  %v1232_v28 = vpop.permute.xlu1 %1231 }
 0x216   :  { %v740_v33 = vadd.f32 %v1561_v29, %v656_v30  ;;  %v1227_v30 = vpop.permute.xlu0 %1226 }
 0x218   :  { %v1828_v41 = vpack.c.bf16 %v740_v33, %v735_v32 }
 0x21a   :  { %1829 = vmatprep.subr.bf16.mxu1 %v1828_v41 }
 0x21b   :  { %1831 = vmatpush3.bf16.msra.mxu1 %v1828_v41 }
 0x21c   :  { %1715 = vmatprep.subr.mxu1 %v2392_v42 }
 0x21e   :  { %1692 = vmatmul.mubr.msk.f32.vlgmr.msra.gmra.mrb[8].mxu1 %vm796_vm1, %v761_v34 }
 0x21f   :  { %1694 = vmatprep.mubr.msk.f32.mxu1 %vm796_vm1, %v762_v35  ;;  %1716 = vmatpush3.msra.mxu1 %v2392_v42 }
 0x222   :  { %1695 = vmatmul.mubr.msk.f32.gmra.mrb[10].mxu1 %vm796_vm1, %v763_v36 }
 0x223   :  { %1697 = vmatprep.mubr.msk.f32.mxu1 %vm796_vm1, %v764_v45 }
 0x226   :  { %1698 = vmatmul.mubr.msk.f32.gmra.mrb[12].mxu1 %vm796_vm1, %v765_v38 }
 0x227   :  { %1700 = vmatprep.mubr.msk.f32.mxu1 %vm796_vm1, %v766_v7  ;;  %v1242_v7 = vpop.permute.xlu1 %1241 }
 0x22a   :  { %1701 = vmatmul.mubr.msk.f32.gmra.mrb[14].mxu1 %vm796_vm1, %v767_v44 }
 0x22b   :  { %1703 = vmatprep.mubr.msk.f32.mxu1 %vm796_vm1, %v768_v46 }
 0x22e   :  { %1704 = vmatmul.mubr.msk.f32.gmra.mrb[16].mxu1 %vm796_vm1, %v769_v48  ;;  %v1237_v48 = vpop.permute.xlu0 %1236 }
 0x22f   :  { %1706 = vmatprep.mubr.msk.f32.mxu1 %vm796_vm1, %v770_v51 }
 0x232   :  { %1707 = vmatmul.mubr.msk.f32.gmra.mrb[18].mxu1 %vm796_vm1, %v771_v49 }
 0x233   :  { %1709 = vmatprep.mubr.msk.f32.mxu1 %vm796_vm1, %v772_v52 }
 0x236   :  { %1710 = vmatmul.mubr.msk.f32.gmra.mrb[20].mxu1 %vm796_vm1, %v773_v14 }
 0x237   :  { %1712 = vmatprep.mubr.msk.f32.mxu1 %vm796_vm1, %v774_v55 }
 0x23a   :  { %1713 = vmatmul.mubr.msk.f32.gmra.mrb[22].mxu1 %vm796_vm1, %v775_v50 }
 0x23b   :  { %1717 = vmatprep.mubr.msk.f32.mxu1 %vm990_vm2, %v744_v59 }
 0x23e   :  { %1718 = vmatmul.mubr.msk.f32.vlgmr.msra.gmra.mrb[8].mxu1 %vm990_vm2, %v745_v56 }
 0x23f   :  { %1720 = vmatprep.mubr.msk.f32.mxu1 %vm990_vm2, %v746_v53 }
 0x242   :  { %1721 = vmatmul.mubr.msk.f32.gmra.mrb[10].mxu1 %vm990_vm2, %v747_v61  ;;  %v1252_v61 = vpop.permute.xlu1 %1251 }
 0x243   :  { %1723 = vmatprep.mubr.msk.f32.mxu1 %vm990_vm2, %v748_v22 }
 0x246   :  { %1724 = vmatmul.mubr.msk.f32.gmra.mrb[12].mxu1 %vm990_vm2, %v749_v62 }
 0x247   :  { %1726 = vmatprep.mubr.msk.f32.mxu1 %vm990_vm2, %v750_v54  ;;  %v1247_v54 = vpop.permute.xlu0 %1246 }
 0x24a   :  { %1727 = vmatmul.mubr.msk.f32.gmra.mrb[14].mxu1 %vm990_vm2, %v751_v63 }
 0x24b   :  { %1729 = vmatprep.mubr.msk.f32.mxu1 %vm990_vm2, %v752_v0 }
 0x24e   :  { %1730 = vmatmul.mubr.msk.f32.gmra.mrb[16].mxu1 %vm990_vm2, %v753_v57 }
 0x24f   :  { %1732 = vmatprep.mubr.msk.f32.mxu1 %vm990_vm2, %v754_v1 }
 0x252   :  { %1733 = vmatmul.mubr.msk.f32.gmra.mrb[18].mxu1 %vm990_vm2, %v755_v31 }
 0x253   :  { %1735 = vmatprep.mubr.msk.f32.mxu1 %vm990_vm2, %v756_v2 }
 0x256   :  { %1736 = vmatmul.mubr.msk.f32.gmra.mrb[20].mxu1 %vm990_vm2, %v757_v58 }
 0x257   :  { %1738 = vmatprep.mubr.msk.f32.mxu1 %vm990_vm2, %v758_v4 }
 0x25a   :  { %1739 = vmatmul.mubr.msk.f32.gmra.mrb[22].mxu1 %vm990_vm2, %v759_v3  ;;  %v1262_v3 = vpop.permute.xlu1 %1261 }
 0x311   :  { %v1719_v6 = vpop.f32.mrb[8].mxu1 }
 0x312   :  { %v1265_v8 = vadd.f32 %v1719_v6, %v1192_v43  ;;  %v1105_v9 = vpop.f32.mrb[9].mxu1 }
 0x313   :  { %v1264_v10 = vadd.f32 %v1187_v16, %v1105_v9  ;;  %v1257_v16 = vpop.permute.xlu0 %1256 }
 0x314   :  { %v1281_v11 = vmax.f32 %v1265_v8, 0.0 }
 0x315   :  { %v1280_v15 = vmax.f32 %v1264_v10, 0.0  ;;  %v1722_v17 = vpop.f32.mrb[10].mxu1  ;;  %v793_v10 = vld [vmem:[%s2549_s9 + $0x8] sm:$0xff]  ;;  %s1911_s9 = smov [#allocation2]  }
 0x316   :  { %v1267_v19 = vadd.f32 %v1722_v17, %v1202_v39  ;;  %v1115_v20 = vpop.f32.mrb[11].mxu1  ;;  %s1405_s8 = sshll.u32 %s1911_s9, 4  ;;  %s1406_s8 = int_to_ptr.vmem [resolvable:$true] %s1405_s8 }
 0x317   :  { %v1832_v21 = vpack.c.bf16 %v1281_v11, %v1280_v15  ;;  %v1266_v23 = vadd.f32 %v1197_v47, %v1115_v20  ;;  %v1304_v11 = vpop.permute.xlu0 %1303  ;;  %v1299_v20 = vpop.permute.xlu1 %1298  ;;  %s1886_s10 = scalar_lea.vmem %s1406_s8, 16  ;;  %s1890_s25 = scalar_lea.vmem %s1406_s8, 32 }
 0x318   :  { %v1283_v24 = vmax.f32 %v1267_v19, 0.0  ;;  %p1887_p0 = scmp.ne.s32.totalorder %s1406_s8, %s1886_s10  ;;  %p1891_p1 = scmp.lt.s32.totalorder %s1406_s8, %s1406_s8 }
 0x319   :  { %v1282_v25 = vmax.f32 %v1266_v23, 0.0  ;;  %v1725_v26 = vpop.f32.mrb[12].mxu1  ;;  %1833 = vmatprep.subr.bf16.mxu0 %v1832_v21  ;;  %p1892_p2 = scmp.lt.s32.totalorder %s1890_s25, %s1886_s10 }
 0x31a   :  { %v1269_v27 = vadd.f32 %v1725_v26, %v1212_v60  ;;  %v1125_v40 = vpop.f32.mrb[13].mxu1  ;;  %1835 = vmatpush3.bf16.msra.mxu0 %v1832_v21 }
 0x31b   :  { %v1836_v29 = vpack.c.bf16 %v1283_v24, %v1282_v25  ;;  %v1268_v37 = vadd.f32 %v1207_v5, %v1125_v40  ;;  %p1893_p3 = por %p1892_p2, %p1891_p1 }
 0x31c   :  { %v1285_v32 = vmax.f32 %v1269_v27, 0.0 }
 0x31d   :  { %v1284_v33 = vmax.f32 %v1268_v37, 0.0  ;;  %v1728_v41 = vpop.f32.mrb[14].mxu1  ;;  %1837 = vmatprep.subr.bf16.mxu0 %v1836_v29  ;;  %p1894_p4 = pnand %p1893_p3, %p1887_p0 }
 0x31e   :  { %v1271_v34 = vadd.f32 %v1728_v41, %v1222_v12  ;;  %v1135_v35 = vpop.f32.mrb[15].mxu1  ;;  %1839 = vmatpush3.bf16.msra.mxu0 %v1836_v29 }
 0x31f   :  { %v1840_v36 = vpack.c.bf16 %v1285_v32, %v1284_v33  ;;  %v1270_v45 = vadd.f32 %v1217_v18, %v1135_v35 }
 0x320   :  { %v1287_v38 = vmax.f32 %v1271_v34, 0.0 }
 0x321   :  { %v1286_v44 = vmax.f32 %v1270_v45, 0.0  ;;  %v1731_v46 = vpop.f32.mrb[16].mxu1  ;;  %1841 = vmatprep.subr.bf16.mxu0 %v1840_v36 }
 0x322   :  { %v1273_v51 = vadd.f32 %v1731_v46, %v1232_v28  ;;  %v1145_v49 = vpop.f32.mrb[17].mxu1  ;;  %1843 = vmatpush3.bf16.msra.mxu0 %v1840_v36 }
 0x323   :  { %v1844_v52 = vpack.c.bf16 %v1287_v38, %v1286_v44  ;;  %v1272_v14 = vadd.f32 %v1227_v30, %v1145_v49 }
 0x324   :  { %v1289_v55 = vmax.f32 %v1273_v51, 0.0 }
 0x325   :  { %v1288_v50 = vmax.f32 %v1272_v14, 0.0  ;;  %v1734_v59 = vpop.f32.mrb[18].mxu1  ;;  %1845 = vmatprep.subr.bf16.mxu0 %v1844_v52 }
 0x326   :  { %v1275_v56 = vadd.f32 %v1734_v59, %v1242_v7  ;;  %v1155_v53 = vpop.f32.mrb[19].mxu1  ;;  %1847 = vmatpush3.bf16.msra.mxu0 %v1844_v52 }
 0x327   :  { %v1848_v22 = vpack.c.bf16 %v1289_v55, %v1288_v50  ;;  %v1274_v62 = vadd.f32 %v1237_v48, %v1155_v53 }
 0x328   :  { %v1291_v63 = vmax.f32 %v1275_v56, 0.0 }
 0x329   :  { %v1290_v0 = vmax.f32 %v1274_v62, 0.0  ;;  %v1737_v57 = vpop.f32.mrb[20].mxu1  ;;  %1849 = vmatprep.subr.bf16.mxu0 %v1848_v22 }
 0x32a   :  { %v1277_v1 = vadd.f32 %v1737_v57, %v1252_v61  ;;  %v1165_v31 = vpop.f32.mrb[21].mxu1  ;;  %1851 = vmatpush3.bf16.msra.mxu0 %v1848_v22 }
 0x32b   :  { %v1852_v2 = vpack.c.bf16 %v1291_v63, %v1290_v0  ;;  %v1276_v58 = vadd.f32 %v1247_v54, %v1165_v31 }
 0x32c   :  { %v1293_v4 = vmax.f32 %v1277_v1, 0.0 }
 0x32d   :  { %v1292_v13 = vmax.f32 %v1276_v58, 0.0  ;;  %v1740_v43 = vpop.f32.mrb[22].mxu1  ;;  %1853 = vmatprep.subr.bf16.mxu0 %v1852_v2 }
 0x32e   :  { %v1279_v39 = vadd.f32 %v1740_v43, %v1262_v3  ;;  %v1175_v47 = vpop.f32.mrb[23].mxu1  ;;  %1855 = vmatpush3.bf16.msra.mxu0 %v1852_v2 }
 0x32f   :  { %v1856_v60 = vpack.c.bf16 %v1293_v4, %v1292_v13  ;;  %v1278_v5 = vadd.f32 %v1257_v16, %v1175_v47 }
 0x330   :  { %v1295_v6 = vmax.f32 %v1279_v39, 0.0 }
 0x331   :  { %v1294_v8 = vmax.f32 %v1278_v5, 0.0  ;;  %1857 = vmatprep.subr.bf16.mxu0 %v1856_v60 }
 0x332   :  { %1859 = vmatpush3.bf16.msra.mxu0 %v1856_v60 }
 0x333   :  { %v1860_v9 = vpack.c.bf16 %v1295_v6, %v1294_v8 }
 0x335   :  { %1861 = vmatprep.subr.bf16.mxu0 %v1860_v9 }
 0x336   :  { %1863 = vmatpush3.bf16.msra.mxu0 %v1860_v9 }
 0x339   :  { %1774 = vmatmul.mubr.f32.vlgmr.msra.gmra.mrb[32].mxu0 %v793_v10 }
 0x40c   :  { %v1775_v12 = vpop.f32.mrb[32].mxu0 }
 0x40d   :  { %v1378_v15 = vadd.f32 %v1775_v12, %v1304_v11  ;;  %v1372_v17 = vpop.f32.mrb[33].mxu0 }
 0x40e   :  { %v1373_v21 = vadd.f32 %v1372_v17, %v1299_v20 }
 0x40f   :  { %v1382_v18 = vsub.f32 0.0, %v1378_v15 }
 0x410   :  { %v1381_v23 = vsub.f32 %v2392_v42, %v1373_v21 }
 0x411   :  { %v1383_v19 = vmul.f32 1.442695, %v1382_v18 }
 0x413   :  { %1884 = vpow2.f32 %v1383_v19 }
 0x41d   :  { %v1885_v24 = vpop.eup %1884 }
 0x41e   :  { %v1385_v25 = vmul.f32 %v1885_v24, %v1381_v23 }
 0x420   :  { %v1386_v26 = vmul.f32 -0.5, %v1385_v25 }
 0x422   :  { %v1387_v27 = vmul.f32 %v1386_v26, %v1385_v25 }
 0x424   :  { %v1388_v40 = vsub.f32 %v1387_v27, %v1378_v15 }
 0x426   :  { %v1389_v28 = vsel %vm990_vm2, %v1388_v40, 0.0 }
 0x427   :  { %v1390_v29 = vrot.slane %v1389_v28, 4 }
 0x429   :  { %v1391_v37 = vadd.f32 %v1390_v29, %v1389_v28 }
 0x42b   :  { %v1392_v30 = vrot.slane %v1391_v37, 2 }
 0x42d   :  { %v1393_v32 = vadd.f32 %v1392_v30, %v1391_v37 }
 0x42f   :  { %v1394_v33 = vrot.slane %v1393_v32, 1 }
 0x431   :  { %v1395_v41 = vadd.f32 %v1394_v33, %v1393_v32 }
 0x433   :  { %v1396_v34 = vsub.f32 7.351508, %v1395_v41 }
 0x435   :  { %1398 = vst.msk [vmem:[#allocation2] sm:$0x1] %vm1397_vm3, %v1396_v34 }
 0x436   :  { %1897 = shalt.err (!%p1894_p4)
}
 0x437   :  { %s1898_s5 = scalar_lea.hbm %s2551_s11, 16 }
 0x438   :  { %p1899_p5 = scmp.ne.s32.totalorder %s2551_s11, %s1898_s5  ;;  %p1902_p6 = scmp.lt.u32.totalorder %s1898_s5, %s2551_s11 }
 0x43a   :  { %p1904_p7 = pnand %p1902_p6, %p1899_p5 }
 0x43c   :  { %1907 = shalt.err (!%p1904_p7)
}
 0x43d   :  { %1408 = dma.vmem_to_hbm [thread:$0]  %s1406_s8, 16, %s2551_s11, [#allocation3]  }
 0x43e   :  { %1908 = dma.done.wait [#allocation3], 16  }
 0x43f   :  { %1909 = vsyncadd [#allocation3], 4294967280 }
 0x440   :  { %1412 = vsyncpa [#allocation3], 1 }

</bundles_post_ra>
